<compile_context>
chip_gen: v7x
topology: tpu7x:2x2x1
jax: 0.10.0
libtpu: 0.0.40
codegen_flags: <defaults>
</compile_context>

<pallas_src>
import jax
import jax.numpy as jnp
from jax import lax
from jax.experimental import pallas as pl
from jax.experimental.pallas import tpu as pltpu


def _round_up(x, m):
    return (x + m - 1) // m * m


def _pick_tile(total, target, granule=128):
    """Largest multiple of `granule` that divides `total` and is <= target.

    `total` is always a multiple of `granule` here, so `granule` is a valid
    fallback and no extra padding copy is ever needed in the forward path."""
    best = granule
    t = granule
    while t <= min(total, target):
        if total % t == 0:
            best = t
        t += granule
    return best


# ---------------------------------------------------------------------------
# Kernel 1: K-tiled, Dv-parallel vision backbone (flatten -> linear -> tanh)
# ---------------------------------------------------------------------------
def _vision_backbone_kernel(pix_ref, wvb_ref, pooled_ref):
    # Grid = (Dv tiles ["parallel"], K tiles ["arbitrary"]).  The f32 output
    # block is resident across the K axis and acts as the accumulator.
    k = pl.program_id(1)

    @pl.when(k == 0)
    def _():
        pooled_ref[...] = jnp.zeros_like(pooled_ref)

    pooled_ref[...] += jnp.dot(pix_ref[...], wvb_ref[...],
                               preferred_element_type=jnp.float32)

    @pl.when(k == pl.num_programs(1) - 1)
    def _():
        pooled_ref[...] = jnp.tanh(pooled_ref[...])


# ---------------------------------------------------------------------------
# Kernel 2: projections + L2 norm + cosine-similarity logits (tiny epilogue)
# ---------------------------------------------------------------------------
def _projection_logits_kernel(
    pooled_ref,   # [BP, DvP] f32  vision pooler output
    txt_ref,      # [BP, DtP] f32  pooled text features (zero-padded cols)
    wvp_ref,      # [DvP, PP] f32  visual_projection.weight.T (padded)
    wtp_ref,      # [DtP, PP] f32  text_projection.weight.T (padded)
    ls_ref,       # [1, 1]    f32  exp(logit_scale) (SMEM, pre-exponentiated)
    img_out,      # [BP, PP]  f32  normalized image embeds
    txt_out,      # [BP, PP]  f32  normalized text embeds
    lpt_out,      # [BP, BL]  f32  logits_per_text (lane-dense)
    lpi_out,      # [BP, BL]  f32  logits_per_image (lane-dense)
    img_pad_ref,  # [BL, PP]  f32  scratch: row-padded image embeds
    txt_pad_ref,  # [BL, PP]  f32  scratch: row-padded text embeds
):
    # Projections (Linear, bias=False) — kept in f32; these are tiny.
    image_embeds = jnp.dot(pooled_ref[...], wvp_ref[...],
                           preferred_element_type=jnp.float32)
    text_embeds = jnp.dot(txt_ref[...], wtp_ref[...],
                          preferred_element_type=jnp.float32)

    # L2 normalize with rsqrt (EUP) instead of divide (VALU).
    eps = 1e-12
    img_inv = lax.rsqrt(
        jnp.sum(image_embeds * image_embeds, axis=-1, keepdims=True) + eps)
    txt_inv = lax.rsqrt(
        jnp.sum(text_embeds * text_embeds, axis=-1, keepdims=True) + eps)
    image_n = image_embeds * img_inv
    text_n = text_embeds * txt_inv

    img_out[...] = image_n
    txt_out[...] = text_n

    # Stage row-padded (lane-dense) copies of the peer operands so the logits
    # stores are unmasked full-lane vst's; padded rows are zero.
    bp = image_n.shape[0]
    img_pad_ref[...] = jnp.zeros_like(img_pad_ref)
    txt_pad_ref[...] = jnp.zeros_like(txt_pad_ref)
    img_pad_ref[0:bp, :] = image_n
    txt_pad_ref[0:bp, :] = text_n

    # Cosine-similarity logits; contract last dims directly (no explicit .T).
    scale = ls_ref[0, 0]  # exp(logit_scale) pre-computed in the wrapper
    dims = (((1,), (1,)), ((), ()))
    lpt_out[...] = scale * lax.dot_general(text_n, img_pad_ref[...], dims,
                                           preferred_element_type=jnp.float32)
    lpi_out[...] = scale * lax.dot_general(image_n, txt_pad_ref[...], dims,
                                           preferred_element_type=jnp.float32)


# ---------------------------------------------------------------------------
# One-time parameter preparation (hoisted OUT of the per-call forward path)
# ---------------------------------------------------------------------------
def prepare_params(params):
    wvb = params["w_vision_backbone"]   # [K, Dv]
    wvp = params["w_vproj"]             # [Dv, P]
    wtp = params["w_tproj"]             # [Dt, P]
    K, Dv = wvb.shape
    Dt, P = wtp.shape

    KP = _round_up(K, 128)
    DvP = _round_up(Dv, 128)
    DtP = _round_up(Dt, 128)
    PP = _round_up(P, 128)

    # Dominant HBM stream: bf16, padded ONCE here (not per call).
    wvb_p = jnp.zeros((KP, DvP), jnp.bfloat16).at[:K, :Dv].set(
        wvb.astype(jnp.bfloat16))
    # Small projection weights stay f32 (negligible bandwidth, better numerics).
    wvp_p = jnp.zeros((DvP, PP), jnp.float32).at[:Dv, :P].set(
        wvp.astype(jnp.float32))
    wtp_p = jnp.zeros((DtP, PP), jnp.float32).at[:Dt, :P].set(
        wtp.astype(jnp.float32))

    prepped = {
        "text_embedding": params["text_embedding"],
        "wvb_padded": wvb_p,
        "wvp_padded": wvp_p,
        "wtp_padded": wtp_p,
        "logit_scale_exp": jnp.exp(params["logit_scale"]).reshape(1, 1)
                              .astype(jnp.float32),
    }
    meta = {"K": K, "Dv": Dv, "Dt": Dt, "P": P}
    return prepped, meta


# ---------------------------------------------------------------------------
# Forward wrapper
# ---------------------------------------------------------------------------
def vision_text_encoder_forward(
    input_ids,      # [B, S] int32
    pixel_values,   # [B, C, H, W] f32 (NCHW, PyTorch convention)
    prepped,        # output of prepare_params
    meta,           # static dims dict from prepare_params
    *,
    tk=1024,        # K tile (multiple of 128); sweep 512..2048
    tdv=512,        # Dv tile (multiple of 128); >1 tile feeds v7x's 2nd TC
):
    B, C, H, W = pixel_values.shape
    K = C * H * W
    P = meta["P"]
    KP, DvP = prepped["wvb_padded"].shape
    DtP, PP = prepped["wtp_padded"].shape
    Dt = prepped["text_embedding"].shape[1]

    # --- glue: synthetic text backbone = embedding lookup + mean pool -------
    # TODO(synk): fuse the gather + mean-pool in-kernel via scalar prefetch
    # (PrefetchScalarGridSpec) if the text backbone stays this simple.
    tok_emb = jnp.take(prepped["text_embedding"], input_ids, axis=0)  # [B,S,Dt]
    text_pooled = jnp.mean(tok_emb, axis=1)                           # [B,Dt]

    # --- per-call activation padding only (weights already padded) ----------
    BP = max(16, _round_up(B, 16))     # bf16 sublane packing = 16 rows
    pix_flat = pixel_values.reshape(B, K).astype(jnp.bfloat16)
    if BP == B and KP == K:
        pix_p = pix_flat
    else:
        pix_p = jnp.zeros((BP, KP), jnp.bfloat16).at[:B, :K].set(pix_flat)
    txt_p = jnp.zeros((BP, DtP), jnp.float32).at[:B, :Dt].set(
        text_pooled.astype(jnp.float32))

    TK = _pick_tile(KP, tk)
    TDv = _pick_tile(DvP, tdv)

    # Explicit VMEM budget: double-buffered pix & weight tiles + resident f32
    # output tile, with 2x headroom; capped under v7x's 64 MiB physical VMEM.
    est = 2 * (BP * TK * 2) + 2 * (TK * TDv * 2) + 2 * (BP * TDv * 4)
    vmem_limit = int(min(max(2 * est, 16 << 20), 60 << 20))

    # --- Kernel 1: vision backbone (the HBM-bandwidth-dominant matmul) ------
    pooled = pl.pallas_call(
        _vision_backbone_kernel,
        out_shape=jax.ShapeDtypeStruct((BP, DvP), jnp.float32),
        grid_spec=pltpu.PrefetchScalarGridSpec(
            num_scalar_prefetch=0,
            grid=(DvP // TDv, KP // TK),
            in_specs=[
                pl.BlockSpec((BP, TK), lambda d, k: (0, k)),   # pixels
                pl.BlockSpec((TK, TDv), lambda d, k: (k, d)),  # backbone W
            ],
            out_specs=pl.BlockSpec((BP, TDv), lambda d, k: (0, d)),
        ),
        compiler_params=pltpu.CompilerParams(
            dimension_semantics=("parallel", "arbitrary"),
            vmem_limit_bytes=vmem_limit,
        ),
    )(pix_p, prepped["wvb_padded"])

    # --- Kernel 2: projections + L2 norm + logits (tiny epilogue) -----------
    BL = _round_up(BP, 128)            # lane-dense logits width

    img_e, txt_e, lpt, lpi = pl.pallas_call(
        _projection_logits_kernel,
        out_shape=(
            jax.ShapeDtypeStruct((BP, PP), jnp.float32),
            jax.ShapeDtypeStruct((BP, PP), jnp.float32),
            jax.ShapeDtypeStruct((BP, BL), jnp.float32),
            jax.ShapeDtypeStruct((BP, BL), jnp.float32),
        ),
        grid_spec=pltpu.PrefetchScalarGridSpec(
            num_scalar_prefetch=0,
            grid=(1,),
            in_specs=[
                pl.BlockSpec((BP, DvP), lambda i: (0, 0)),   # vision pooled
                pl.BlockSpec((BP, DtP), lambda i: (0, 0)),   # text pooled
                pl.BlockSpec((DvP, PP), lambda i: (0, 0)),   # visual_projection
                pl.BlockSpec((DtP, PP), lambda i: (0, 0)),   # text_projection
                pl.BlockSpec(memory_space=pltpu.MemorySpace.SMEM),  # exp(scale)
            ],
            out_specs=(
                pl.BlockSpec((BP, PP), lambda i: (0, 0)),
                pl.BlockSpec((BP, PP), lambda i: (0, 0)),
                pl.BlockSpec((BP, BL), lambda i: (0, 0)),
                pl.BlockSpec((BP, BL), lambda i: (0, 0)),
            ),
            scratch_shapes=[pltpu.VMEM((BL, PP), jnp.float32),
                            pltpu.VMEM((BL, PP), jnp.float32)],
        ),
        compiler_params=pltpu.CompilerParams(
            dimension_semantics=("arbitrary",),
        ),
    )(pooled, txt_p, prepped["wvp_padded"], prepped["wtp_padded"],
      prepped["logit_scale_exp"])

    return {
        "vision_pooled_embeds": img_e[:B, :P],
        "text_pooled_embeds": txt_e[:B, :P],
        "logits_per_text": lpt[:B, :B],
        "logits_per_image": lpi[:B, :B],
    }


# ---------------------------------------------------------------------------
# Params / reference
# ---------------------------------------------------------------------------
def init_params(key, *, c, h, w, vision_embed_dim, text_embed_dim,
                projection_dim, vocab_size, logit_scale_init_value=2.6592):
    k1, k2, k3, k4 = jax.random.split(key, 4)
    flat_dim = c * h * w
    # nn.Linear(in, out, bias=False).weight is [out, in]; we store [in, out].
    return {
        "w_vision_backbone": (jax.random.normal(
            k1, (flat_dim, vision_embed_dim), jnp.float32)
            * (1.0 / jnp.sqrt(flat_dim))),
        "text_embedding": jax.random.normal(
            k2, (vocab_size, text_embed_dim), jnp.float32) * 0.02,
        "w_vproj": (jax.random.normal(
            k3, (vision_embed_dim, projection_dim), jnp.float32)
            * (1.0 / jnp.sqrt(vision_embed_dim))),
        "w_tproj": (jax.random.normal(
            k4, (text_embed_dim, projection_dim), jnp.float32)
            * (1.0 / jnp.sqrt(text_embed_dim))),
        "logit_scale": jnp.asarray(logit_scale_init_value, jnp.float32),
    }


def _reference_forward(input_ids, pixel_values, params):
    """Pure-JAX f32 reference of the same forward (for correctness checks)."""
    B = pixel_values.shape[0]
    K = pixel_values.shape[1] * pixel_values.shape[2] * pixel_values.shape[3]
    tok = jnp.take(params["text_embedding"], input_ids, axis=0)
    text_pooled = jnp.mean(tok, axis=1)
    vision_pooled = jnp.tanh(pixel_values.reshape(B, K)
                             @ params["w_vision_backbone"])
    img = vision_pooled @ params["w_vproj"]
    txt = text_pooled @ params["w_tproj"]
    img = img / jnp.linalg.norm(img, axis=-1, keepdims=True)
    txt = txt / jnp.linalg.norm(txt, axis=-1, keepdims=True)
    scale = jnp.exp(params["logit_scale"])
    lpt = scale * (txt @ img.T)
    return img, txt, lpt, lpt.T


if __name__ == "__main__":
    B, C, H, W = 2, 4, 16, 16
    SEQ, VOCAB = 8, 64
    VISION_EMBED_DIM, TEXT_EMBED_DIM, PROJECTION_DIM = 32, 48, 128

    key = jax.random.PRNGKey(0)
    kp, kx, kt = jax.random.split(key, 3)

    params = init_params(
        kp, c=C, h=H, w=W,
        vision_embed_dim=VISION_EMBED_DIM,
        text_embed_dim=TEXT_EMBED_DIM,
        projection_dim=PROJECTION_DIM,
        vocab_size=VOCAB,
    )
    prepped, meta = prepare_params(params)   # one-time, outside the hot path

    pixel_values = jax.random.normal(kx, (B, C, H, W), jnp.float32)
    input_ids = jax.random.randint(kt, (B, SEQ), 0, VOCAB, dtype=jnp.int32)

    # tk=256 at these tiny demo shapes so the K-tiled accumulation path is
    # actually exercised (K = 4*16*16 = 1024 -> 4 K steps).
    outputs = vision_text_encoder_forward(input_ids, pixel_values,
                                          prepped, meta, tk=256)
    jax.block_until_ready(outputs)

    # --- correctness checks vs pure-JAX f32 reference ------------------------
    ref_img, ref_txt, ref_lpt, ref_lpi = _reference_forward(
        input_ids, pixel_values, params)

    assert outputs["vision_pooled_embeds"].shape == (B, PROJECTION_DIM)
    assert outputs["logits_per_text"].shape == (B, B)
    img_n = jnp.linalg.norm(outputs["vision_pooled_embeds"], axis=-1)
    txt_n = jnp.linalg.norm(outputs["text_pooled_embeds"], axis=-1)
    assert jnp.allclose(img_n, 1.0, atol=1e-4), img_n
    assert jnp.allclose(txt_n, 1.0, atol=1e-4), txt_n
    assert jnp.allclose(outputs["logits_per_image"],
                        outputs["logits_per_text"].T, atol=1e-4)
    assert jnp.allclose(outputs["vision_pooled_embeds"], ref_img,
                        atol=2e-2, rtol=2e-2)
    assert jnp.allclose(outputs["text_pooled_embeds"], ref_txt,
                        atol=2e-2, rtol=2e-2)
    assert jnp.allclose(outputs["logits_per_text"], ref_lpt,
                        atol=5e-2, rtol=5e-2)
    assert jnp.allclose(outputs["logits_per_image"], ref_lpi,
                        atol=5e-2, rtol=5e-2)

    print("KERNEL_OK")
</pallas_src>

<mosaic_0001>
module attributes {stable_mosaic.version = 11 : i64} {
  func.func @_vision_backbone_kernel(%arg0: i32, %arg1: i32, %arg2: memref<16x256xbf16, #tpu.memory_space<vmem>>, %arg3: memref<256x128xbf16, #tpu.memory_space<vmem>>, %arg4: memref<16x128xf32, #tpu.memory_space<vmem>>) attributes {dimension_semantics = [#tpu.dimension_semantics<parallel>, #tpu.dimension_semantics<arbitrary>], iteration_bounds = array<i64: 1, 4>, scalar_prefetch = 0 : i64, scratch_operands = 0 : i64, tpu.core_type = #tpu.core_type<tc>, window_params = [{transform_indices = @transform_0, window_bounds = array<i64: 16, 256>}, {transform_indices = @transform_1, window_bounds = array<i64: 256, 128>}, {transform_indices = @transform_2, window_bounds = array<i64: 16, 128>}]} {
    %c0_i32 = arith.constant 0 : i32
    %0 = arith.cmpi eq, %arg1, %c0_i32 : i32
    %1 = arith.extui %0 : i1 to i32
    %c0_i32_0 = arith.constant 0 : i32
    %2 = arith.cmpi ne, %1, %c0_i32_0 : i32
    scf.if %2 {
      %cst_9 = arith.constant 0.000000e+00 : f32
      %12 = vector.broadcast %cst_9 : f32 to vector<16x128xf32>
      %c0_10 = arith.constant 0 : index
      %c0_11 = arith.constant 0 : index
      %13 = vector.load %arg4[%c0_10, %c0_11] : memref<16x128xf32, #tpu.memory_space<vmem>>, vector<16x128xf32>
      tpu.vector_store %arg4[%c0_10, %c0_11], %12 {strides = array<i32>} : memref<16x128xf32, #tpu.memory_space<vmem>>, vector<16x128xf32>,
    } else {
    }
    %c0 = arith.constant 0 : index
    %c0_1 = arith.constant 0 : index
    %3 = vector.load %arg4[%c0, %c0_1] : memref<16x128xf32, #tpu.memory_space<vmem>>, vector<16x128xf32>
    %c0_2 = arith.constant 0 : index
    %c0_3 = arith.constant 0 : index
    %4 = vector.load %arg2[%c0_2, %c0_3] : memref<16x256xbf16, #tpu.memory_space<vmem>>, vector<16x256xbf16>
    %c0_4 = arith.constant 0 : index
    %c0_5 = arith.constant 0 : index
    %5 = vector.load %arg3[%c0_4, %c0_5] : memref<256x128xbf16, #tpu.memory_space<vmem>>, vector<256x128xbf16>
    %cst = arith.constant dense<0.000000e+00> : vector<16x128xf32>
    %6 = tpu.matmul %4, %5, %cst {dimension_numbers = #tpu.dot_dimension_numbers<[1], [0], [0], [1], [0, 0, 1, 1], [], []>} : vector<16x256xbf16>, vector<256x128xbf16>, vector<16x128xf32> -> vector<16x128xf32>
    %7 = arith.addf %3, %6 : vector<16x128xf32>
    %c0_6 = arith.constant 0 : index
    %c0_7 = arith.constant 0 : index
    %8 = vector.load %arg4[%c0_6, %c0_7] : memref<16x128xf32, #tpu.memory_space<vmem>>, vector<16x128xf32>
    tpu.vector_store %arg4[%c0_6, %c0_7], %7 {strides = array<i32>} : memref<16x128xf32, #tpu.memory_space<vmem>>, vector<16x128xf32>,
    %c3_i32 = arith.constant 3 : i32
    %9 = arith.cmpi eq, %arg1, %c3_i32 : i32
    %10 = arith.extui %9 : i1 to i32
    %c0_i32_8 = arith.constant 0 : i32
    %11 = arith.cmpi ne, %10, %c0_i32_8 : i32
    scf.if %11 {
      %c0_9 = arith.constant 0 : index
      %c0_10 = arith.constant 0 : index
      %12 = vector.load %arg4[%c0_9, %c0_10] : memref<16x128xf32, #tpu.memory_space<vmem>>, vector<16x128xf32>
      %13 = math.tanh %12 : vector<16x128xf32>
      %c0_11 = arith.constant 0 : index
      %c0_12 = arith.constant 0 : index
      %14 = vector.load %arg4[%c0_11, %c0_12] : memref<16x128xf32, #tpu.memory_space<vmem>>, vector<16x128xf32>
      tpu.vector_store %arg4[%c0_11, %c0_12], %13 {strides = array<i32>} : memref<16x128xf32, #tpu.memory_space<vmem>>, vector<16x128xf32>,
    } else {
    }
    return
  }
  func.func @transform_0(%arg0: i32, %arg1: i32) -> (i32, i32) {
    %c0_i32 = arith.constant 0 : i32
    %c0_i32_0 = arith.constant 0 : i32
    return %c0_i32, %arg1 : i32, i32
  }
  func.func @transform_1(%arg0: i32, %arg1: i32) -> (i32, i32) {
    %c0_i32 = arith.constant 0 : i32
    return %arg1, %arg0 : i32, i32
  }
  func.func @transform_2(%arg0: i32, %arg1: i32) -> (i32, i32) {
    %c0_i32 = arith.constant 0 : i32
    %c0_i32_0 = arith.constant 0 : i32
    return %c0_i32, %arg0 : i32, i32
  }
}

</mosaic_0001>

<bundles_post_ra>
// kernel: tpu_custom_call.1
= control target key start
LH: loop header
LB: loop body
LE: loop exit
PB: predicated region body
PF: predicated region fallthrough
CT: control target
= control target key end

     0   :  { %7 = vsyncpa [#allocation3], 0  ;;  %s1066_s0 = inlined_call_operand.hbm [shape: bf16[16,1024], index: 0, kind: input, shape index: {}]   ;;  %s1067_s1 = inlined_call_operand.hbm [shape: bf16[1024,128], index: 1, kind: input, shape index: {}]   ;;  %s1068_s2 = inlined_call_operand.hbm [shape: f32[16,128], index: 2, kind: output, shape index: {}]  }
   0x1   :  { %9 = vsyncpa [#allocation3 + $0x1], 0 }
   0x2   :  { %10 = vsyncpa [#allocation6], 0 }
   0x3   :  { %12 = vsyncpa [#allocation6 + $0x1], 0 }
   0x4   :  { %13 = vsyncpa [#allocation4], 0  ;;  %s843_s9 = smov 0   ;;  %s845_s10 = smov 0  }
   0x5   :  { %s847_s11 = smov 0   ;;  %s849_s12 = smov 0  }
   0x6   :  { %s851_s13 = smov 0   ;;  %s853_s14 = smov 0  }
   0x7 LB: > { %s513_s15 = sadd.s32 4294967295, %s815_s14   ;;  %s28_s16 = sadd.s32 1, %s811_s13  ;;  %s815_s14 = sphi %s853_s14, %s19_s14   ;;  %s811_s13 = sphi %s851_s13, %s1081_s13   ;;  %s807_s12 = sphi %s849_s12, %s1080_s12   ;;  %s803_s11 = sphi %s847_s11, %s1079_s11   ;;  %s799_s10 = sphi %s845_s10, %s1078_s10   ;;  %s795_s9 = sphi %s843_s9, %s1077_s9  }
   0x8   : > { %p29_p0 = scmp.ge.s32.totalorder %s28_s16, 4  ;;  %s38_s17 = sadd.s32 1, %s803_s11 }
   0x9   : > { %p45_p1 = scmp.ne.s32.totalorder %s803_s11, %s799_s10  ;;  %p46_p2 = scmp.eq.s32.totalorder %s815_s14, 0 }
   0xa   : > { %s1083_s16 = smov (%p29_p0, %s28_s16), 0  ;;  %p51_p4 = scmp.ne.s32.totalorder %s799_s10, %s795_s9 }
   0xb   : > { %p879_p3 = por %p46_p2, %p45_p1  ;;  %s35_s19 = ssub.s32 %s811_s13, %s1083_s16 }
   0xc   : > { %p52_p5 = scmp.eq.s32.totalorder %s513_s15, 0  ;;  %p36_p6 = scmp.eq.s32.totalorder %s35_s19, 0 }
   0xd   : > { %p588_p8 = scmp.lt.s32.totalorder %s815_s14, 4  ;;  %s897_s22 = sand.u32 1, %s803_s11  }
   0xe   : > { %p888_p7 = por %p52_p5, %p51_p4  ;;  %s549_s23 = sshll.u32 %s811_s13, 7 }
   0xf   : > { %s894_s21 = scalar_select %p36_p6, %s803_s11, %s38_s17  }
  0x10   : > { %s1071_s20 = scalar_select %p888_p7, 1, 0 }
  0x11   : > { %s516_s24 = sshll.u32 %s897_s22, 4  ;;  %s904_s27 = scalar_lea.hbm %s1066_s0, %s549_s23 }
  0x12   : > { %s133_s28 = scalar_lea.vmem [#allocation2], %s516_s24  ;;  %p908_p9 = pnand %p588_p8, %p879_p3 }
  0x13   : > { %s140_s29 = sshll.u32 %s133_s28, 4  ;;  %s130_s3 = scalar_lea.sflag [#allocation3], %s897_s22  ;;  %s912_s29 = int_to_ptr.vmem [resolvable:$true] %s140_s29 }
  0x14   : > { %s671_s4 = scalar_lea.hbm %s904_s27, 256  ;;  %p673_p12 = pneg %p908_p9 }
  0x15   : > { %p672_p11 = scmp.ne.s32.totalorder %s904_s27, %s671_s4  ;;  %s676_s7 = scalar_lea.hbm %s1066_s0, 1024 }
  0x16   : > { %p677_p1 = scmp.lt.u32.totalorder %s904_s27, %s1066_s0  ;;  %p678_p2 = scmp.lt.u32.totalorder %s676_s7, %s671_s4 }
  0x17   : > { %p674_p13 = pnand %p673_p12, %p672_p11  ;;  %p680_p4 = scmp.lt.u32.totalorder %s671_s4, %s904_s27 }
  0x18   : > { %p679_p3 = por %p678_p2, %p677_p1 }
  0x19   : > { %p675_p0 = pneg %p674_p13 }
  0x1a   : > { %p681_p5 = por %p680_p4, %p679_p3 }
  0x1c   : > { %p682_p6 = pnand %p681_p5, %p675_p0 }
  0x1e   : > { %685 = shalt.err (!%p682_p6)
}
  0x1f   : > { %s686_s17 = scalar_lea.vmem %s912_s29, 256  ;;  %s817_s18 = smov [#allocation2]  }
  0x20   : > { %p687_p8 = scmp.ne.s32.totalorder %s912_s29, %s686_s17  ;;  %s691_s19 = sshll.u32 %s817_s18, 4  ;;  %s692_s19 = int_to_ptr.vmem [resolvable:$false] %s691_s19 }
  0x21   : > { %s693_s23 = scalar_lea.vmem %s692_s19, 512  ;;  %p694_p10 = scmp.lt.s32.totalorder %s912_s29, %s692_s19 }
  0x22   : > { %p689_p11 = pnand %p687_p8, %p673_p12  ;;  %p695_p1 = scmp.lt.s32.totalorder %s693_s23, %s686_s17 }
  0x24   : > { %p690_p13 = pneg %p689_p11  ;;  %p696_p2 = por %p695_p1, %p694_p10 }
  0x26   : > { %p697_p3 = pnand %p696_p2, %p690_p13 }
  0x28   : > { %700 = shalt.err (!%p697_p3)
}
  0x29   : > { %s818_s24 = smov 512   ;;  %s819_s25 = smov 128  }
  0x2a   : > { %s820_s26 = smov 8   ;;  %p170_p0 = scmp.lt.s32.totalorder %s815_s14, 5 }
  0x2b   : > { %584 = dma.hbm_to_vmem [thread:$0]  (!%p908_p9), %s904_s27, 256, %s912_s29, %s130_s3, %s818_s24, %s819_s25, %s820_s26  }
  0x2c   : > { %s519_s28 = sshll.u32 %s897_s22, 7  ;;  %s550_s4 = sshll.u32 %s811_s13, 11 }
  0x2d   : > { %p1073_p10 = scmp.ge.s32.totalorder %s815_s14, 1  ;;  %s955_s8 = scalar_lea.hbm %s1067_s1, %s550_s4 }
  0x2e   : > { %s154_s9 = scalar_lea.vmem [#allocation5], %s519_s28  ;;  %s151_s27 = scalar_lea.sflag [#allocation6], %s897_s22 }
  0x2f   : > { %p948_p4 = pnand %p1073_p10, %p170_p0  ;;  %s162_s17 = sshll.u32 %s154_s9, 4  ;;  %s957_s17 = int_to_ptr.vmem [resolvable:$true] %s162_s17 }
  0x30   : > { %s701_s29 = scalar_lea.hbm %s955_s8, 2048  ;;  %s706_s19 = scalar_lea.hbm %s1067_s1, 8192 }
  0x31   : > { %p702_p5 = scmp.ne.s32.totalorder %s955_s8, %s701_s29  ;;  %p707_p11 = scmp.lt.u32.totalorder %s955_s8, %s1067_s1 }
  0x32   : > { %p708_p13 = scmp.lt.u32.totalorder %s706_s19, %s701_s29  ;;  %p710_p2 = scmp.lt.u32.totalorder %s701_s29, %s955_s8 }
  0x33   : > { %p704_p6 = pnand %p702_p5, %p673_p12 }
  0x34   : > { %p709_p1 = por %p708_p13, %p707_p11 }
  0x35   : > { %p705_p8 = pneg %p704_p6 }
  0x36   : > { %p711_p3 = por %p710_p2, %p709_p1 }
  0x38   : > { %p712_p0 = pnand %p711_p3, %p705_p8 }
  0x3a   : > { %715 = shalt.err (!%p712_p0)
}
  0x3b   : > { %s716_s25 = scalar_lea.vmem %s957_s17, 2048  ;;  %s821_s26 = smov [#allocation5]  }
  0x3c   : > { %p717_p10 = scmp.ne.s32.totalorder %s957_s17, %s716_s25  ;;  %s721_s28 = sshll.u32 %s821_s26, 4  ;;  %s722_s28 = int_to_ptr.vmem [resolvable:$false] %s721_s28 }
  0x3d   : > { %s723_s4 = scalar_lea.vmem %s722_s28, 4096  ;;  %p724_p7 = scmp.lt.s32.totalorder %s957_s17, %s722_s28 }
  0x3e   : > { %p719_p5 = pnand %p717_p10, %p673_p12  ;;  %p725_p11 = scmp.lt.s32.totalorder %s723_s4, %s716_s25 }
  0x40   : > { %p720_p6 = pneg %p719_p5  ;;  %p726_p13 = por %p725_p11, %p724_p7 }
  0x42   : > { %p727_p1 = pnand %p726_p13, %p720_p6 }
  0x44   : > { %730 = shalt.err (!%p727_p1)
}
  0x45   : > { %s822_s6 = smov 64   ;;  %s823_s7 = smov 4  }
  0x46   : > { %587 = dma.hbm_to_vmem [thread:$0]  (!%p908_p9), %s955_s8, 2048, %s957_s17, %s151_s27, %s822_s6, %s822_s6, %s823_s7  }
  0x47   : > { %174 = sbr.rel (%p948_p4) target bundleno = 389 (0x185), region = 28  ;;  %s176_s9 = sand.u32 (!%p948_p4), 1, %s799_s10  }
  0x48   : > { %s523_s29 = sshll.u32 (!%p948_p4), %s176_s9, 4  ;;  %s177_s3 = scalar_lea.sflag (!%p948_p4), [#allocation3], %s176_s9 }
  0x49   : > { %s988_s18 = scalar_lea.vmem (!%p948_p4), [#allocation2], %s523_s29  ;;  %p1075_p7 = scmp.ne.s32.totalorder (!%p948_p4), %s1071_s20, 0 }
  0x4e   : > { %782 = dma.done.wait (%p1075_p7), %s177_s3, 256  }
  0x4f   : > { %784 = vsyncadd (%p1075_p7), %s177_s3, 4294967040  ;;  %s524_s19 = sshll.u32 %s176_s9, 7  ;;  %s186_s30 = scalar_lea.sflag [#allocation6], %s176_s9 }
  0x50   : > { %s994_s22 = scalar_lea.vmem [#allocation5], %s524_s19 }
  0x51   : > { %786 = dma.done.wait (%p1075_p7), %s186_s30, 2048  }
  0x52   : > { %788 = vsyncadd (%p1075_p7), %s186_s30, 4294965248  ;;  %p525_p9 = scmp.ne.s32.totalorder %s807_s12, 0 }
  0x53   : > { %v824_v0 = vmov (!%p525_p9), 0.0  }
  0x54   : > { %216 = sbr.rel (%p525_p9) target bundleno = 91 (0x5b), region = 40  ;;  %217 = vst [vmem:[#allocation7] sm:$0xff] (!%p525_p9), %v824_v0  ;;  %218 = vst [vmem:[#allocation7 + $0x8] sm:$0xff] (!%p525_p9), %v824_v0 }
  0x5b PF: > { %v648_v1 = vld [vmem:[%s994_s22 + $0x40] sm:$0xff]   ;;  %v650_v3 = vld [vmem:[%s994_s22 + $0x48] sm:$0xff]   ;;  %v652_v5 = vld [vmem:[%s994_s22 + $0x50] sm:$0xff]   ;;  %p544_p12 = scmp.ne.s32.totalorder %s807_s12, 3 }
  0x5c   : > { %v649_v2 = vld [vmem:[%s994_s22] sm:$0xff]   ;;  %551 = vmatprep.subr.bf16.mxu0 %v648_v1  ;;  %v651_v4 = vld [vmem:[%s994_s22 + $0x8] sm:$0xff]   ;;  %v653_v6 = vld [vmem:[%s994_s22 + $0x10] sm:$0xff]  }
  0x5d   : > { %552 = vmatpush3.bf16.msra.mxu0 %v649_v2  ;;  %v654_v7 = vld [vmem:[%s994_s22 + $0x58] sm:$0xff]   ;;  %v656_v9 = vld [vmem:[%s994_s22 + $0x60] sm:$0xff]   ;;  %v658_v11 = vld [vmem:[%s994_s22 + $0x68] sm:$0xff]  }
  0x5e   : > { %553 = vmatprep.subr.bf16.mxu0 %v650_v3  ;;  %v655_v8 = vld [vmem:[%s994_s22 + $0x18] sm:$0xff]   ;;  %v657_v10 = vld [vmem:[%s994_s22 + $0x20] sm:$0xff]   ;;  %v659_v13 = vld [vmem:[%s994_s22 + $0x28] sm:$0xff]  }
  0x5f   : > { %v666_v12 = vld [vmem:[%s988_s18 + $0x4] ss:$8 sps:$4 sm:$0xff]   ;;  %v664_v18 = vld [vmem:[%s988_s18] ss:$8 sps:$4 sm:$0xff]  }
  0x60   : > { %393 = vmatprep.mubr.bf16.mxu0 %v666_v12  ;;  %v660_v14 = vld [vmem:[%s994_s22 + $0x70] sm:$0xff]   ;;  %v662_v16 = vld [vmem:[%s994_s22 + $0x78] sm:$0xff]   ;;  %v219_v20 = vld [vmem:[#allocation7] sm:$0xff] }
  0x61   : > { %554 = vmatpush3.bf16.msra.mxu0 %v651_v4  ;;  %v661_v15 = vld [vmem:[%s994_s22 + $0x30] sm:$0xff]   ;;  %v663_v17 = vld [vmem:[%s994_s22 + $0x38] sm:$0xff]   ;;  %v220_v24 = vld [vmem:[#allocation7 + $0x8] sm:$0xff] }
  0x62   : > { %555 = vmatprep.subr.bf16.mxu0 %v652_v5 }
  0x65   : > { %556 = vmatpush3.bf16.msra.mxu0 %v653_v6 }
  0x66   : > { %557 = vmatprep.subr.bf16.mxu0 %v654_v7 }
  0x69   : > { %558 = vmatpush3.bf16.msra.mxu0 %v655_v8 }
  0x6a   : > { %559 = vmatprep.subr.bf16.mxu0 %v656_v9 }
  0x6d   : > { %560 = vmatpush3.bf16.msra.mxu0 %v657_v10 }
  0x6e   : > { %561 = vmatprep.subr.bf16.mxu0 %v658_v11 }
  0x71   : > { %562 = vmatpush3.bf16.msra.mxu0 %v659_v13 }
  0x72   : > { %563 = vmatprep.subr.bf16.mxu0 %v660_v14 }
  0x75   : > { %564 = vmatpush3.bf16.msra.mxu0 %v661_v15 }
  0x76   : > { %565 = vmatprep.subr.bf16.mxu0 %v662_v16 }
  0x79   : > { %566 = vmatpush3.bf16.msra.mxu0 %v663_v17 }
  0x7c   : > { %394 = vmatmul.mubr.bf16.vlgmr.msra.gmra.mrb[0].mxu0 %v664_v18 }
 0x14f   : > { %v567_v19 = vpop.f32.mrb[0].mxu0 }
 0x150   : > { %v568_v21 = vpop.f32.mrb[1].mxu0 }
 0x151   : > { %v569_v22 = vadd.f32 %v568_v21, %v567_v19  ;;  %v570_v23 = vpop.f32.mrb[2].mxu0  ;;  %409 = sbr.rel (%p544_p12) target bundleno = 363 (0x16b), region = 44 }
 0x152   : > { %v571_v25 = vpop.f32.mrb[3].mxu0 }
 0x153   : > { %v402_v26 = vadd.f32 %v569_v22, %v219_v20  ;;  %v572_v27 = vadd.f32 %v571_v25, %v570_v23 }
 0x155   : > { %404 = vst [vmem:[#allocation7] sm:$0xff] %v402_v26  ;;  %v403_v28 = vadd.f32 %v572_v27, %v220_v24 }
 0x157   : > { %405 = vst [vmem:[#allocation7 + $0x8] sm:$0xff] %v403_v28 }
 0x15c   : > { %v410_v29 = vld [vmem:[#allocation7] sm:$0xff] }
 0x15d   : > { %667 = vtanh.f32 %v410_v29 }
 0x15e   : > { %v411_v30 = vld [vmem:[#allocation7 + $0x8] sm:$0xff] }
 0x15f   : > { %669 = vtanh.f32 %v411_v30 }
 0x167   : > { %v668_v31 = vpop.eup %667 }
 0x168   : > { %414 = vst [vmem:[#allocation7] sm:$0xff] %v668_v31 }
 0x169   : > { %v670_v32 = vpop.eup %669 }
 0x16a   : > { %415 = vst [vmem:[#allocation7 + $0x8] sm:$0xff] %v670_v32 }
 0x16b PF: > { %p1022_p4 = scmp.eq.s32.totalorder %s513_s15, 3  ;;  %s825_s5 = smov [#allocation7]  }
 0x16c   : > { %s424_s8 = sshll.u32 %s825_s5, 4  ;;  %s425_s8 = int_to_ptr.vmem [resolvable:$true] %s424_s8 }
 0x16d   : > { %s731_s12 = scalar_lea.vmem %s425_s8, 256  ;;  %p738_p0 = scmp.lt.s32.totalorder %s425_s8, %s425_s8 }
 0x16e   : > { %p732_p8 = scmp.ne.s32.totalorder %s425_s8, %s731_s12  ;;  %p739_p10 = scmp.lt.s32.totalorder %s731_s12, %s731_s12 }
 0x170   : > { %p733_p2 = pnand %p732_p8, %p1022_p4  ;;  %p740_p5 = por %p739_p10, %p738_p0 }
 0x172   : > { %p734_p3 = pneg %p733_p2 }
 0x174   : > { %p741_p6 = pnand %p740_p5, %p734_p3 }
 0x176   : > { %744 = shalt.err (!%p741_p6)
}
 0x177   : > { %s745_s15 = scalar_lea.hbm %s1068_s2, 256 }
 0x178   : > { %p746_p11 = scmp.ne.s32.totalorder %s1068_s2, %s745_s15  ;;  %p751_p7 = scmp.lt.u32.totalorder %s745_s15, %s1068_s2 }
 0x17a   : > { %p747_p13 = pnand %p746_p11, %p1022_p4 }
 0x17c   : > { %p748_p1 = pneg %p747_p13 }
 0x17e   : > { %p753_p9 = pnand %p751_p7, %p748_p1 }
 0x180   : > { %756 = shalt.err (!%p753_p9)
}
 0x181   : > { %s826_s28 = smov 128   ;;  %s827_s4 = smov 8  }
 0x182   : > { %578 = dma.vmem_to_hbm [thread:$0]  (%p1022_p4), %s425_s8, 256, %s1068_s2, [#allocation4], %s826_s28, %s826_s28, %s827_s4  }
 0x183   : > { %790 = dma.done.wait (%p1022_p4), [#allocation4], 256  }
 0x184   : > { %792 = vsyncadd (%p1022_p4), [#allocation4], 4294967040 }
 0x185 PF: > { %s19_s14 = sadd.s32 1, %s815_s14   ;;  %s1077_s9 = smov %s799_s10 }
 0x186   : > { %p16_p12 = scmp.ge.s32.totalorder %s19_s14, 6   ;;  %s1078_s10 = smov %s803_s11 }
 0x187   : > { %s1079_s11 = smov %s894_s21  ;;  %s1080_s12 = smov %s811_s13 }
 0x188   : > { %s1081_s13 = smov %s1083_s16  ;;  %18 = sbr.rel (!%p16_p12) target bundleno = 7 (0x7), region = 87 }
 0x18f   :  { %440 = vsyncpa [#allocation3], 1 }
 0x190   :  { %442 = vsyncpa [#allocation3 + $0x1], 1 }
 0x191   :  { %443 = vsyncpa [#allocation6], 1 }
 0x192   :  { %445 = vsyncpa [#allocation6 + $0x1], 1 }
 0x193   :  { %446 = vsyncpa [#allocation4], 1 }
 0x194   :  { %448 = vsyncpa [#allocation4 + $0x1], 1 }

</bundles_post_ra>
